<compile_context>
chip_gen: v7x
topology: tpu7x:2x2x1
jax: 0.10.0
libtpu: 0.0.40
codegen_flags: <defaults>
</compile_context>

<pallas_src>
import math
import numpy as np
import jax
import jax.numpy as jnp
from jax.experimental import pallas as pl
from jax.experimental.pallas import tpu as pltpu


# ----------------------------------------------------------------------------
# Host-side construction of the (reflection-pad-fused) 1D blur matrices
# ----------------------------------------------------------------------------
def _norm_cdf(v):
    return 0.5 * (1.0 + math.erf(v / math.sqrt(2.0)))


def _gauss_ker1d(size, sigma):
    """1D increments of the normal CDF, identical to the PyTorch gauss_kernel
    construction (scipy.stats.norm.cdf replaced by the erf-based CDF)."""
    interval = (2.0 * sigma + 1.0) / size
    x = np.linspace(-sigma - interval / 2.0, sigma + interval / 2.0, size + 1)
    cdf = np.array([_norm_cdf(v) for v in x], dtype=np.float64)
    return np.diff(cdf)  # all entries >= 0


def _build_blur_matrices(size, sigma, stride, pad, H, W):
    """Banded matrices Bv (Ho,H) and Bh (Wo,W) such that, per 2D plane,
       conv2d(reflection_pad(x), K, stride) == Bv @ x @ Bh^T  exactly."""
    assert pad <= H - 1 and pad <= W - 1, "ReflectionPad2d requires pad < dim"
    ker1d = _gauss_ker1d(size, sigma)
    f = np.sqrt(ker1d)
    f = f / f.sum()  # K == outer(f, f) exactly (ker1d >= 0)

    def conv_matrix(out_len, padded_len):
        A = np.zeros((out_len, padded_len), dtype=np.float64)
        for o in range(out_len):
            A[o, o * stride: o * stride + size] += f
        return A

    def reflect_matrix(orig_len, padded_len):
        # nn.ReflectionPad2d / np.pad(mode="reflect"): edge not repeated.
        P = np.zeros((padded_len, orig_len), dtype=np.float64)
        for i in range(padded_len):
            j = i - pad
            if j < 0:
                j = -j
            elif j >= orig_len:
                j = 2 * (orig_len - 1) - j
            P[i, j] = 1.0
        return P

    Hp, Wp = H + 2 * pad, W + 2 * pad
    Ho = (Hp - size) // stride + 1
    Wo = (Wp - size) // stride + 1
    Bv = conv_matrix(Ho, Hp) @ reflect_matrix(H, Hp)   # (Ho, H)
    Bh = conv_matrix(Wo, Wp) @ reflect_matrix(W, Wp)   # (Wo, W)
    return Bv.astype(np.float32), Bh.astype(np.float32), Ho, Wo


def _band_tiles(dense, tile_out, align):
    """Split a banded matrix `dense` (OUT, IN) into ceil(OUT/tile_out) slabs.
    Returns (offsets[int32, nt], band, slabs[nt, tile_out, band]) with
      dense[t*tile_out:(t+1)*tile_out, :] @ v ==
          slabs[t] @ v[offsets[t] : offsets[t] + band]        (exactly)."""
    OUT, IN = dense.shape
    nt = -(-OUT // tile_out)
    spans = []
    for t in range(nt):
        r0, r1 = t * tile_out, min((t + 1) * tile_out, OUT)
        nz = np.nonzero(np.any(dense[r0:r1] != 0.0, axis=0))[0]
        c0 = (int(nz[0]) // align) * align
        spans.append((c0, int(nz[-1])))
    band = max(c1 - c0 + 1 for c0, c1 in spans)
    band = min(((band + align - 1) // align) * align, IN)
    offsets = np.zeros((nt,), dtype=np.int32)
    slabs = np.zeros((nt, tile_out, band), dtype=dense.dtype)
    for t, (c0, _) in enumerate(spans):
        c0 = max(0, min(c0, IN - band))
        r0, r1 = t * tile_out, min((t + 1) * tile_out, OUT)
        slabs[t, : r1 - r0, :] = dense[r0:r1, c0:c0 + band]
        offsets[t] = c0
    return offsets, band, slabs


# ----------------------------------------------------------------------------
# Pallas kernel factory
# ----------------------------------------------------------------------------
def make_gaussian_blur(size, sigma, in_channels, stride, pad, N, H, W,
                       tile_ho=None, tile_wo=None, mxu_dtype=jnp.float32):
    """Returns forward(x) implementing GaussianBlurLayer.forward for NCHW input
    of static shape (N, in_channels, H, W). mxu_dtype=jnp.bfloat16 enables the
    faster bf16 MXU path (~1e-3 error; default f32 keeps 1e-5 accuracy)."""
    C = in_channels
    Bv, Bh, Ho, Wo = _build_blur_matrices(size, sigma, stride, pad, H, W)

    # ---- tile sizes (output block sublane dim must be 8-aligned or full) ----
    if tile_ho is None:
        tile_ho = Ho if Ho <= 256 else 256
    if tile_wo is None:
        tile_wo = Wo if Wo <= 512 else 512
    tile_ho = min(tile_ho, Ho)
    tile_wo = min(tile_wo, Wo)
    assert tile_ho == Ho or tile_ho % 8 == 0, "tile_ho must be 8-aligned or == Ho"

    nH = -(-Ho // tile_ho)
    nW = -(-Wo // tile_wo)

    # Band offsets aligned to sublane/lane granularity at real sizes (free at
    # toy sizes where the band degenerates to (almost) the full extent).
    row_align = 8 if H >= 64 else 1
    col_align = 128 if W >= 512 else (8 if W >= 64 else 1)

    row_off, band_v, bv_slabs = _band_tiles(Bv, tile_ho, row_align)   # (nH,), (nH,tile_ho,band_v)
    col_off_np, band_w, bh_slabs = _band_tiles(Bh, tile_wo, col_align)
    bh_slabs_t = np.ascontiguousarray(np.transpose(bh_slabs, (0, 2, 1)))  # (nW, band_w, tile_wo)
    col_off = [int(c) for c in col_off_np]          # static python ints -> static lane slices
    row_mult = row_align if (row_align > 1 and np.all(row_off % row_align == 0)) else 1

    use_low_prec = (mxu_dtype != jnp.float32)

    def blur_kernel(row_off_ref, x_ref, bv_ref, bh_ref, o_ref):
        # row_off_ref : SMEM (nH,) int32         input-row offset per Ho tile
        # x_ref       : (1, C, H, W)             unpadded input, resident across Ho tiles
        # bv_ref      : (1, tile_ho, band_v)     vertical banded slab for this Ho tile
        # bh_ref      : (nW, band_w, tile_wo)    all horizontal banded slabs (transposed)
        # o_ref       : (1, C, tile_ho, Wo)
        t = pl.program_id(1)
        row0 = row_off_ref[t]
        if row_mult > 1:
            row0 = pl.multiple_of(row0, row_mult)

        # Channel sum in f32 over only the halo band of input rows
        # (weights are identical over every (oc, ic) pair).
        xs = x_ref[0, :, pl.ds(row0, band_v), :].astype(jnp.float32)   # (C, band_v, W)
        xsum = jnp.sum(xs, axis=0)                                     # (band_v, W)

        bv = bv_ref[0]
        if use_low_prec:
            bv = bv.astype(mxu_dtype)
            xsum = xsum.astype(mxu_dtype)
        # Vertical banded pass on the MXU: (tile_ho, band_v) @ (band_v, W).
        tmp = jnp.dot(bv, xsum, preferred_element_type=jnp.float32)    # (tile_ho, W)
        if use_low_prec:
            tmp = tmp.astype(mxu_dtype)

        # Horizontal banded pass: static loop over Wo tiles, static column
        # slices of tmp, per-channel stores (no C*Ho*Wo broadcast temporary).
        for wt in range(nW):
            c0 = col_off[wt]
            blk = jnp.dot(tmp[:, c0:c0 + band_w], bh_ref[wt],
                          preferred_element_type=jnp.float32)          # (tile_ho, tile_wo)
            w0 = wt * tile_wo
            w1 = min(Wo, w0 + tile_wo)
            blk = blk[:, : w1 - w0].astype(o_ref.dtype)
            for c in range(C):
                o_ref[0, c, :, w0:w1] = blk

    grid_spec = pltpu.PrefetchScalarGridSpec(
        num_scalar_prefetch=1,
        grid=(N, nH),
        in_specs=[
            # x: index_map ignores the Ho-tile axis -> fetched once per n,
            # stays resident in VMEM across the inner tiles.
            pl.BlockSpec((1, C, H, W), lambda n, t, ro: (n, 0, 0, 0)),
            pl.BlockSpec((1, tile_ho, band_v), lambda n, t, ro: (t, 0, 0)),
            # constant index -> not re-DMA'd across grid steps; banding already
            # shrank it to O(Wo*band) bytes, so double-buffering cost is noise.
            pl.BlockSpec((nW, band_w, tile_wo), lambda n, t, ro: (0, 0, 0)),
        ],
        out_specs=pl.BlockSpec((1, C, tile_ho, Wo), lambda n, t, ro: (n, 0, t, 0)),
    )

    # Banded FLOP count + bytes for XLA's scheduler.
    flops = int(N * (C * H * W
                     + 2 * nH * tile_ho * band_v * W
                     + 2 * nH * nW * tile_ho * band_w * tile_wo))
    bytes_accessed = int(N * C * H * W * 4 + N * C * Ho * Wo * 4
                         + bv_slabs.size * 4 + bh_slabs_t.size * 4)
    cost = pl.CostEstimate(flops=flops, transcendentals=0,
                           bytes_accessed=bytes_accessed)

    # VMEM budget: working set with headroom, capped at the v7x 64 MiB budget.
    slab_bytes = 2 if use_low_prec else 4
    vmem_est = (2 * C * H * W * 4
                + 2 * C * tile_ho * Wo * 4
                + 2 * tile_ho * band_v * slab_bytes
                + 2 * nW * band_w * tile_wo * slab_bytes
                + (tile_ho + band_v) * W * 4)
    vmem_limit = int(min(64 * 1024 * 1024,
                         max(32 * 1024 * 1024, int(1.5 * vmem_est))))

    blur_call = pl.pallas_call(
        blur_kernel,
        out_shape=jax.ShapeDtypeStruct((N, C, Ho, Wo), jnp.float32),
        grid_spec=grid_spec,
        compiler_params=pltpu.CompilerParams(
            dimension_semantics=("parallel", "parallel"),
            vmem_limit_bytes=vmem_limit),
        cost_estimate=cost,
    )

    row_off_j = jnp.asarray(row_off)                       # int32 SMEM prefetch
    bv_j = jnp.asarray(bv_slabs).astype(mxu_dtype)         # f32 by default
    bh_j = jnp.asarray(bh_slabs_t).astype(mxu_dtype)

    def forward(x):
        # Native input dtype: no wrapper-side astype (no extra HBM convert
        # pass); the kernel upcasts the channel sum to f32.
        assert x.shape == (N, C, H, W)
        return blur_call(row_off_j, x, bv_j, bh_j)

    return forward


# ----------------------------------------------------------------------------
# Honest float64 reference: reflect pad + full conv2d with the tiled Gaussian
# ----------------------------------------------------------------------------
def _reference_np(x, size, sigma, stride, pad):
    x = np.asarray(x, dtype=np.float64)
    N, C, H, W = x.shape
    k1d = _gauss_ker1d(size, sigma)
    K = np.sqrt(np.outer(k1d, k1d))
    K = K / K.sum()
    xp = np.pad(x, ((0, 0), (0, 0), (pad, pad), (pad, pad)), mode="reflect")
    Hp, Wp = xp.shape[2], xp.shape[3]
    Ho = (Hp - size) // stride + 1
    Wo = (Wp - size) // stride + 1
    out = np.zeros((N, C, Ho, Wo), dtype=np.float64)
    for oc in range(C):
        for ic in range(C):
            for di in range(size):
                for dj in range(size):
                    patch = xp[:, ic,
                               di: di + (Ho - 1) * stride + 1: stride,
                               dj: dj + (Wo - 1) * stride + 1: stride]
                    out[:, oc] += K[di, dj] * patch
    return out


if __name__ == "__main__":
    # Small shapes consistent with the module.
    N, C, H, W = 2, 4, 16, 16
    size, sigma, stride, pad = 3, 1.5, 1, 1

    key = jax.random.PRNGKey(0)
    x = jax.random.normal(key, (N, C, H, W), dtype=jnp.float32)

    # Small tiles so the banded Ho-grid axis and the in-kernel Wo-band loop
    # (multiple tiles, nonzero offsets) are genuinely exercised at the toy
    # shape and checked against the float64 reference.
    forward = make_gaussian_blur(size, sigma, C, stride, pad, N, H, W,
                                 tile_ho=8, tile_wo=8)
    out = jax.block_until_ready(forward(x))

    ref = _reference_np(np.asarray(x), size, sigma, stride, pad)
    np.testing.assert_allclose(np.asarray(out), ref, rtol=1e-5, atol=1e-5)

    print("KERNEL_OK")
</pallas_src>

<mosaic_0001>
module attributes {stable_mosaic.version = 11 : i64} {
  func.func @blur_kernel(%arg0: i32, %arg1: i32, %arg2: memref<2xi32, #tpu.memory_space<smem>>, %arg3: memref<1x4x16x16xf32, #tpu.memory_space<vmem>>, %arg4: memref<1x8x9xf32, #tpu.memory_space<vmem>>, %arg5: memref<2x9x8xf32, #tpu.memory_space<vmem>>, %arg6: memref<1x4x8x16xf32, #tpu.memory_space<vmem>>) attributes {dimension_semantics = [#tpu.dimension_semantics<parallel>, #tpu.dimension_semantics<parallel>], iteration_bounds = array<i64: 2, 2>, scalar_prefetch = 1 : i64, scratch_operands = 0 : i64, tpu.core_type = #tpu.core_type<tc>, window_params = [{transform_indices = @transform_0, window_bounds = array<i64: 1, 4, 16, 16>}, {transform_indices = @transform_1, window_bounds = array<i64: 1, 8, 9>}, {pipeline_mode = #tpu.pipeline_mode<synchronous>, transform_indices = @transform_2, window_bounds = array<i64: 2, 9, 8>}, {transform_indices = @transform_3, window_bounds = array<i64: 1, 4, 8, 16>}]} {
    %0 = arith.index_cast %arg1 : i32 to index
    %1 = memref.load %arg2[%0] : memref<2xi32, #tpu.memory_space<smem>>
    %c0 = arith.constant 0 : index
    %c0_0 = arith.constant 0 : index
    %2 = arith.index_cast %1 : i32 to index
    %c0_1 = arith.constant 0 : index
    %3 = vector.load %arg3[%c0, %c0_0, %2, %c0_1] : memref<1x4x16x16xf32, #tpu.memory_space<vmem>>, vector<1x4x9x16xf32>
    %4 = vector.shape_cast %3 : vector<1x4x9x16xf32> to vector<4x9x16xf32>
    %cst = arith.constant dense<0.000000e+00> : vector<9x16xf32>
    %5 = vector.multi_reduction <add>, %4, %cst [0] : vector<4x9x16xf32> to vector<9x16xf32>
    %c0_2 = arith.constant 0 : index
    %c0_3 = arith.constant 0 : index
    %c0_4 = arith.constant 0 : index
    %6 = vector.load %arg4[%c0_2, %c0_3, %c0_4] : memref<1x8x9xf32, #tpu.memory_space<vmem>>, vector<1x8x9xf32>
    %7 = vector.shape_cast %6 : vector<1x8x9xf32> to vector<8x9xf32>
    %cst_5 = arith.constant dense<0.000000e+00> : vector<8x16xf32>
    %8 = tpu.matmul %7, %5, %cst_5 {dimension_numbers = #tpu.dot_dimension_numbers<[1], [0], [0], [1], [0, 0, 1, 1], [], []>} : vector<8x9xf32>, vector<9x16xf32>, vector<8x16xf32> -> vector<8x16xf32>
    %9 = vector.extract_strided_slice %8 {offsets = [0, 0], sizes = [8, 9], strides = [1, 1]} : vector<8x16xf32> to vector<8x9xf32>
    %c0_6 = arith.constant 0 : index
    %c0_7 = arith.constant 0 : index
    %c0_8 = arith.constant 0 : index
    %10 = vector.load %arg5[%c0_6, %c0_7, %c0_8] : memref<2x9x8xf32, #tpu.memory_space<vmem>>, vector<1x9x8xf32>
    %11 = vector.shape_cast %10 : vector<1x9x8xf32> to vector<9x8xf32>
    %cst_9 = arith.constant dense<0.000000e+00> : vector<8x8xf32>
    %12 = tpu.matmul %9, %11, %cst_9 {dimension_numbers = #tpu.dot_dimension_numbers<[1], [0], [0], [1], [0, 0, 1, 1], [], []>} : vector<8x9xf32>, vector<9x8xf32>, vector<8x8xf32> -> vector<8x8xf32>
    %c0_10 = arith.constant 0 : index
    %c0_11 = arith.constant 0 : index
    %c0_12 = arith.constant 0 : index
    %c0_13 = arith.constant 0 : index
    %13 = vector.load %arg6[%c0_10, %c0_11, %c0_12, %c0_13] : memref<1x4x8x16xf32, #tpu.memory_space<vmem>>, vector<1x1x8x8xf32>
    %14 = vector.shape_cast %13 : vector<1x1x8x8xf32> to vector<8x8xf32>
    %15 = vector.shape_cast %12 : vector<8x8xf32> to vector<1x1x8x8xf32>
    tpu.vector_store %arg6[%c0_10, %c0_11, %c0_12, %c0_13], %15 {strides = array<i32>} : memref<1x4x8x16xf32, #tpu.memory_space<vmem>>, vector<1x1x8x8xf32>,
    %c0_14 = arith.constant 0 : index
    %c1 = arith.constant 1 : index
    %c0_15 = arith.constant 0 : index
    %c0_16 = arith.constant 0 : index
    %16 = vector.load %arg6[%c0_14, %c1, %c0_15, %c0_16] : memref<1x4x8x16xf32, #tpu.memory_space<vmem>>, vector<1x1x8x8xf32>
    %17 = vector.shape_cast %16 : vector<1x1x8x8xf32> to vector<8x8xf32>
    %18 = vector.shape_cast %12 : vector<8x8xf32> to vector<1x1x8x8xf32>
    tpu.vector_store %arg6[%c0_14, %c1, %c0_15, %c0_16], %18 {strides = array<i32>} : memref<1x4x8x16xf32, #tpu.memory_space<vmem>>, vector<1x1x8x8xf32>,
    %c0_17 = arith.constant 0 : index
    %c2 = arith.constant 2 : index
    %c0_18 = arith.constant 0 : index
    %c0_19 = arith.constant 0 : index
    %19 = vector.load %arg6[%c0_17, %c2, %c0_18, %c0_19] : memref<1x4x8x16xf32, #tpu.memory_space<vmem>>, vector<1x1x8x8xf32>
    %20 = vector.shape_cast %19 : vector<1x1x8x8xf32> to vector<8x8xf32>
    %21 = vector.shape_cast %12 : vector<8x8xf32> to vector<1x1x8x8xf32>
    tpu.vector_store %arg6[%c0_17, %c2, %c0_18, %c0_19], %21 {strides = array<i32>} : memref<1x4x8x16xf32, #tpu.memory_space<vmem>>, vector<1x1x8x8xf32>,
    %c0_20 = arith.constant 0 : index
    %c3 = arith.constant 3 : index
    %c0_21 = arith.constant 0 : index
    %c0_22 = arith.constant 0 : index
    %22 = vector.load %arg6[%c0_20, %c3, %c0_21, %c0_22] : memref<1x4x8x16xf32, #tpu.memory_space<vmem>>, vector<1x1x8x8xf32>
    %23 = vector.shape_cast %22 : vector<1x1x8x8xf32> to vector<8x8xf32>
    %24 = vector.shape_cast %12 : vector<8x8xf32> to vector<1x1x8x8xf32>
    tpu.vector_store %arg6[%c0_20, %c3, %c0_21, %c0_22], %24 {strides = array<i32>} : memref<1x4x8x16xf32, #tpu.memory_space<vmem>>, vector<1x1x8x8xf32>,
    %25 = vector.extract_strided_slice %8 {offsets = [0, 7], sizes = [8, 9], strides = [1, 1]} : vector<8x16xf32> to vector<8x9xf32>
    %c1_23 = arith.constant 1 : index
    %c0_24 = arith.constant 0 : index
    %c0_25 = arith.constant 0 : index
    %26 = vector.load %arg5[%c1_23, %c0_24, %c0_25] : memref<2x9x8xf32, #tpu.memory_space<vmem>>, vector<1x9x8xf32>
    %27 = vector.shape_cast %26 : vector<1x9x8xf32> to vector<9x8xf32>
    %cst_26 = arith.constant dense<0.000000e+00> : vector<8x8xf32>
    %28 = tpu.matmul %25, %27, %cst_26 {dimension_numbers = #tpu.dot_dimension_numbers<[1], [0], [0], [1], [0, 0, 1, 1], [], []>} : vector<8x9xf32>, vector<9x8xf32>, vector<8x8xf32> -> vector<8x8xf32>
    %c0_27 = arith.constant 0 : index
    %c0_28 = arith.constant 0 : index
    %c0_29 = arith.constant 0 : index
    %c8 = arith.constant 8 : index
    %29 = vector.load %arg6[%c0_27, %c0_28, %c0_29, %c8] : memref<1x4x8x16xf32, #tpu.memory_space<vmem>>, vector<1x1x8x8xf32>
    %30 = vector.shape_cast %29 : vector<1x1x8x8xf32> to vector<8x8xf32>
    %31 = vector.shape_cast %28 : vector<8x8xf32> to vector<1x1x8x8xf32>
    tpu.vector_store %arg6[%c0_27, %c0_28, %c0_29, %c8], %31 {strides = array<i32>} : memref<1x4x8x16xf32, #tpu.memory_space<vmem>>, vector<1x1x8x8xf32>,
    %c0_30 = arith.constant 0 : index
    %c1_31 = arith.constant 1 : index
    %c0_32 = arith.constant 0 : index
    %c8_33 = arith.constant 8 : index
    %32 = vector.load %arg6[%c0_30, %c1_31, %c0_32, %c8_33] : memref<1x4x8x16xf32, #tpu.memory_space<vmem>>, vector<1x1x8x8xf32>
    %33 = vector.shape_cast %32 : vector<1x1x8x8xf32> to vector<8x8xf32>
    %34 = vector.shape_cast %28 : vector<8x8xf32> to vector<1x1x8x8xf32>
    tpu.vector_store %arg6[%c0_30, %c1_31, %c0_32, %c8_33], %34 {strides = array<i32>} : memref<1x4x8x16xf32, #tpu.memory_space<vmem>>, vector<1x1x8x8xf32>,
    %c0_34 = arith.constant 0 : index
    %c2_35 = arith.constant 2 : index
    %c0_36 = arith.constant 0 : index
    %c8_37 = arith.constant 8 : index
    %35 = vector.load %arg6[%c0_34, %c2_35, %c0_36, %c8_37] : memref<1x4x8x16xf32, #tpu.memory_space<vmem>>, vector<1x1x8x8xf32>
    %36 = vector.shape_cast %35 : vector<1x1x8x8xf32> to vector<8x8xf32>
    %37 = vector.shape_cast %28 : vector<8x8xf32> to vector<1x1x8x8xf32>
    tpu.vector_store %arg6[%c0_34, %c2_35, %c0_36, %c8_37], %37 {strides = array<i32>} : memref<1x4x8x16xf32, #tpu.memory_space<vmem>>, vector<1x1x8x8xf32>,
    %c0_38 = arith.constant 0 : index
    %c3_39 = arith.constant 3 : index
    %c0_40 = arith.constant 0 : index
    %c8_41 = arith.constant 8 : index
    %38 = vector.load %arg6[%c0_38, %c3_39, %c0_40, %c8_41] : memref<1x4x8x16xf32, #tpu.memory_space<vmem>>, vector<1x1x8x8xf32>
    %39 = vector.shape_cast %38 : vector<1x1x8x8xf32> to vector<8x8xf32>
    %40 = vector.shape_cast %28 : vector<8x8xf32> to vector<1x1x8x8xf32>
    tpu.vector_store %arg6[%c0_38, %c3_39, %c0_40, %c8_41], %40 {strides = array<i32>} : memref<1x4x8x16xf32, #tpu.memory_space<vmem>>, vector<1x1x8x8xf32>,
    return
  }
  func.func @transform_0(%arg0: i32, %arg1: i32, %arg2: memref<2xi32, #tpu.memory_space<smem>>) -> (i32, i32, i32, i32) {
    %c0_i32 = arith.constant 0 : i32
    %c0_i32_0 = arith.constant 0 : i32
    %c0_i32_1 = arith.constant 0 : i32
    %c0_i32_2 = arith.constant 0 : i32
    return %arg0, %c0_i32, %c0_i32_0, %c0_i32_1 : i32, i32, i32, i32
  }
  func.func @transform_1(%arg0: i32, %arg1: i32, %arg2: memref<2xi32, #tpu.memory_space<smem>>) -> (i32, i32, i32) {
    %c0_i32 = arith.constant 0 : i32
    %c0_i32_0 = arith.constant 0 : i32
    %c0_i32_1 = arith.constant 0 : i32
    return %arg1, %c0_i32, %c0_i32_0 : i32, i32, i32
  }
  func.func @transform_2(%arg0: i32, %arg1: i32, %arg2: memref<2xi32, #tpu.memory_space<smem>>) -> (i32, i32, i32) {
    %c0_i32 = arith.constant 0 : i32
    %c0_i32_0 = arith.constant 0 : i32
    %c0_i32_1 = arith.constant 0 : i32
    %c0_i32_2 = arith.constant 0 : i32
    return %c0_i32, %c0_i32_0, %c0_i32_1 : i32, i32, i32
  }
  func.func @transform_3(%arg0: i32, %arg1: i32, %arg2: memref<2xi32, #tpu.memory_space<smem>>) -> (i32, i32, i32, i32) {
    %c0_i32 = arith.constant 0 : i32
    %c0_i32_0 = arith.constant 0 : i32
    %c0_i32_1 = arith.constant 0 : i32
    return %arg0, %c0_i32, %arg1, %c0_i32_0 : i32, i32, i32, i32
  }
}

</mosaic_0001>

<bundles_post_ra>
// kernel: tpu_custom_call.1
= control target key start
LH: loop header
LB: loop body
LE: loop exit
PB: predicated region body
PF: predicated region fallthrough
CT: control target
= control target key end

     0   :  { %s1279_s0 = inlined_call_operand.vmem [shape: s32[2], index: 0, kind: input, shape index: {}]   ;;  %s1280_s1 = inlined_call_operand.hbm [shape: f32[2,4,16,16], index: 1, kind: input, shape index: {}]   ;;  %s1281_s2 = inlined_call_operand.vmem [shape: f32[2,8,9], index: 2, kind: input, shape index: {}]   ;;  %s1282_s3 = inlined_call_operand.vmem [shape: f32[2,9,8], index: 3, kind: input, shape index: {}]   ;;  %s1283_s4 = inlined_call_operand.hbm [shape: f32[2,4,16,16], index: 4, kind: output, shape index: {}]  }
   0x1   :  { %s9_s17 = sshll.u32 %s1279_s0, 4  ;;  %s10_s17 = int_to_ptr.vmem [resolvable:$true] %s9_s17 }
   0x2   :  { %s807_s18 = scalar_lea.vmem %s10_s17, 16  ;;  %p812_p1 = scmp.lt.s32.totalorder %s10_s17, %s10_s17 }
   0x3   :  { %p808_p0 = scmp.ne.s32.totalorder %s10_s17, %s807_s18  ;;  %p813_p2 = scmp.lt.s32.totalorder %s807_s18, %s807_s18 }
   0x5   :  { %p814_p3 = por %p813_p2, %p812_p1 }
   0x7   :  { %p815_p4 = pnand %p814_p3, %p808_p0 }
   0x9   :  { %818 = shalt.err (!%p815_p4)  }
   0xa   :  { %s975_s19 = smov [#allocation3]  }
   0xb   :  { %12 = dma.vmem_to_smem %s10_s17, 16, %s975_s19, [#allocation2] }
   0xc   :  { %921 = dma.done.wait [#allocation2], 16 }
   0xd   :  { %922 = vsyncadd [#allocation2], 4294967280 }
   0xe   :  { %14 = sfence }
   0xf   :  { %15 = vsyncpa [#allocation5], 0 }
  0x10   :  { %17 = vsyncpa [#allocation5 + $0x1], 0 }
  0x11   :  { %18 = vsyncpa [#allocation6], 0 }
  0x12   :  { %20 = vsyncpa [#allocation6 + $0x1], 0  ;;  %s1016_s20 = smov 0   ;;  %s1018_s0 = smov 0  }
  0x13   :  { %s1020_s21 = smov 0   ;;  %s1022_s22 = smov 0  }
  0x14   :  { %s1024_s23 = smov 0   ;;  %s1026_s24 = smov 0  }
  0x15   :  { %s1028_s25 = smov 0   ;;  %s1030_s26 = smov 0  }
  0x16   :  { %s1032_s27 = smov 0   ;;  %s1034_s28 = smov 0  }
  0x17   :  { %s1036_s29 = smov 0  }
  0x18 LB: > { %s621_s30 = sadd.s32 4294967295, %s973_s29   ;;  %s622_s5 = sadd.s32 4294967294, %s973_s29   ;;  %s973_s29 = sphi %s1036_s29, %s26_s29   ;;  %s969_s28 = sphi %s1034_s28, %s1307_s28   ;;  %s965_s27 = sphi %s1032_s27, %s1306_s27   ;;  %s961_s26 = sphi %s1030_s26, %s1305_s26   ;;  %s957_s25 = sphi %s1028_s25, %s1304_s25   ;;  %s953_s24 = sphi %s1026_s24, %s1303_s24   ;;  %s949_s23 = sphi %s1024_s23, %s1302_s23   ;;  %s945_s22 = sphi %s1022_s22, %s1301_s22   ;;  %s941_s21 = sphi %s1020_s21, %s1300_s21   ;;  %s937_s0 = sphi %s1018_s0, %s1299_s0   ;;  %s933_s20 = sphi %s1016_s20, %s1298_s20  }
  0x19   : > { %s35_s6 = sadd.s32 1, %s965_s27  ;;  %s38_s7 = sadd.s32 1, %s969_s28 }
  0x1a   : > { %p36_p5 = scmp.ge.s32.totalorder %s35_s6, 2  ;;  %s45_s8 = sadd.s32 1, %s953_s24 }
  0x1b   : > { %p52_p6 = scmp.ne.s32.totalorder %s953_s24, %s949_s23  ;;  %p53_p7 = scmp.eq.s32.totalorder %s973_s29, 0 }
  0x1c   : > { %s1309_s6 = smov (%p36_p5, %s35_s6), 0  ;;  %s1311_s7 = smov (!%p36_p5, %s38_s7), %s969_s28 }
  0x1d   : > { %p1080_p8 = por %p53_p7, %p52_p6  ;;  %p58_p9 = scmp.ne.s32.totalorder %s949_s23, %s945_s22 }
  0x1e   : > { %p40_p10 = scmp.ge.s32.totalorder %s1311_s7, 2  ;;  %p59_p11 = scmp.eq.s32.totalorder %s621_s30, 0 }
  0x1f   : > { %s116_s10 = ssub.s32 %s965_s27, %s1309_s6  ;;  %s120_s11 = sadd.s32 1, %s941_s21 }
  0x20   : > { %s1313_s7 = smov (%p40_p10, %s1311_s7), 0  ;;  %p1090_p12 = por %p59_p11, %p58_p9 }
  0x21   : > { %1287 = sst [smem:[#allocation11_spill]] %s1313_s7  ;;  %p130_p13 = scmp.ne.s32.totalorder %s941_s21, %s937_s0 }
  0x22   : > { %s42_s13 = ssub.s32 %s969_s28, %s1313_s7  ;;  %p131_p0 = scmp.eq.s32.totalorder %s621_s30, 3 }
  0x23   : > { %p43_p1 = scmp.eq.s32.totalorder %s42_s13, 0  ;;  %s117_s14 = sor.u32 %s116_s10, %s42_s13 }
  0x24   : > { %p118_p2 = scmp.eq.s32.totalorder %s117_s14, 0  ;;  %p1098_p3 = por %p131_p0, %p130_p13 }
  0x25   : > { %s1103_s16 = scalar_select %p43_p1, %s953_s24, %s45_s8  }
  0x26   : > { %s1289_s15 = scalar_select %p1098_p3, 1, 0 }
  0x27   : > { %s1106_s17 = scalar_select %p118_p2, %s941_s21, %s120_s11  }
  0x28   : > { %p136_p4 = scmp.ne.s32.totalorder %s937_s0, %s933_s20  ;;  %p137_p5 = scmp.eq.s32.totalorder %s622_s5, 3 }
  0x29   : > { %p706_p6 = scmp.lt.s32.totalorder %s973_s29, 4  ;;  %s160_s19 = sand.u32 1, %s953_s24  }
  0x2a   : > { %p1111_p7 = por %p137_p5, %p136_p4  ;;  %s625_s22 = sshll.u32 %s160_s19, 6 }
  0x2b   : > { %s651_s30 = sshll.u32 %s969_s28, 10  ;;  %s164_s8 = scalar_lea.vmem [#allocation4], %s625_s22 }
  0x2c   : > { %s1290_s18 = scalar_select %p1111_p7, 1, 0 }
  0x2d   : > { %s1120_s14 = scalar_lea.hbm %s1280_s1, %s651_s30  ;;  %s171_s11 = sshll.u32 %s164_s8, 4  ;;  %s1122_s11 = int_to_ptr.vmem [resolvable:$true] %s171_s11 }
  0x2e   : > { %p1126_p9 = pnand %p706_p6, %p1080_p8  ;;  %s1131_s7 = scalar_lea.sflag [#allocation5], %s160_s19 }
  0x2f   : > { %s819_s30 = scalar_lea.hbm %s1120_s14, 1024  ;;  %s824_s9 = scalar_lea.hbm %s1280_s1, 2048 }
  0x30   : > { %p820_p11 = scmp.ne.s32.totalorder %s1120_s14, %s819_s30  ;;  %p821_p13 = pneg %p1126_p9 }
  0x31   : > { %p825_p8 = scmp.lt.u32.totalorder %s1120_s14, %s1280_s1  ;;  %p826_p2 = scmp.lt.u32.totalorder %s824_s9, %s819_s30 }
  0x32   : > { %p822_p0 = pnand %p821_p13, %p820_p11  ;;  %p828_p5 = scmp.lt.u32.totalorder %s819_s30, %s1120_s14 }
  0x33   : > { %p827_p4 = por %p826_p2, %p825_p8 }
  0x34   : > { %p823_p1 = pneg %p822_p0 }
  0x35   : > { %p829_p6 = por %p828_p5, %p827_p4 }
  0x37   : > { %p830_p10 = pnand %p829_p6, %p823_p1 }
  0x39   : > { %833 = shalt.err (!%p830_p10)
}
  0x3a   : > { %s834_s19 = scalar_lea.vmem %s1122_s11, 1024  ;;  %s976_s22 = smov [#allocation4]  }
  0x3b   : > { %p835_p11 = scmp.ne.s32.totalorder %s1122_s11, %s834_s19  ;;  %s839_s10 = sshll.u32 %s976_s22, 4  ;;  %s840_s10 = int_to_ptr.vmem [resolvable:$false] %s839_s10 }
  0x3c   : > { %s841_s13 = scalar_lea.vmem %s840_s10, 2048  ;;  %p842_p3 = scmp.lt.s32.totalorder %s1122_s11, %s840_s10 }
  0x3d   : > { %p837_p0 = pnand %p835_p11, %p821_p13  ;;  %p843_p8 = scmp.lt.s32.totalorder %s841_s13, %s834_s19 }
  0x3f   : > { %p838_p7 = pneg %p837_p0  ;;  %p844_p2 = por %p843_p8, %p842_p3 }
  0x41   : > { %p845_p4 = pnand %p844_p2, %p838_p7 }
  0x43   : > { %848 = shalt.err (!%p845_p4)
}
  0x44   : > { %s977_s30 = smov 128   ;;  %s978_s9 = smov 8  }
  0x45   : > { %701 = dma.hbm_to_vmem [thread:$0]  (!%p1126_p9), %s1120_s14, 1024, %s1122_s11, %s1131_s7, %s977_s30, %s977_s30, %s978_s9  }
  0x46   : > { %p186_p10 = scmp.lt.s32.totalorder %s973_s29, 5  ;;  %p1292_p13 = scmp.ge.s32.totalorder %s973_s29, 1 }
  0x48   : > { %p187_p1 = pnand %p1292_p13, %p186_p10 }
  0x49   : > { %s192_s8 = sand.u32 (!%p187_p1), 1, %s949_s23  }
  0x4a   : > { %190 = sbr.rel (%p187_p1) target bundleno = 774 (0x306), region = 32  ;;  %s629_s19 = sshll.u32 (!%p187_p1), %s192_s8, 6 }
  0x4b   : > { %s193_s22 = scalar_lea.sflag (!%p187_p1), [#allocation5], %s192_s8  ;;  %s196_s10 = scalar_lea.vmem (!%p187_p1), [#allocation4], %s629_s19 }
  0x51   : > { %924 = dma.done.wait (%p1090_p12), %s193_s22, 1024  }
  0x52   : > { %926 = vsyncadd (%p1090_p12), %s193_s22, 4294966272  ;;  %v979_v0 = vmov 0.0|0.0   ;;  %s227_s7 = sld [smem:[#allocation3 + %s957_s25]]  ;;  %vm980_vm0 = vmmov 0   ;;  %v981_v1 = vmov 0.0   ;;  %vm258_vm1 = vcmask 1040384  }
  0x53   : > { %682 = vmatprep.subr.bf16.mxu0 %v979_v0  ;;  %686 = vmatprep.subr.bf16.mxu1 %v979_v0  ;;  %p223_p3 = scmp.lt.s32.totalorder %s957_s25, 1  ;;  %vm237_vm2 = vcmask 130048   ;;  %vm245_vm3 = vcmask 122880   ;;  %vm982_vm4 = vmmov 1   ;;  %v332_v3 = vld [vmem:[%s1282_s3] sm:$0xff]  ;;  %vm254_vm6 = vcmask 72704  }
  0x54   : > { %665 = vmatprep.mubr.msk.f32.mxu0 %vm980_vm0, %v981_v1  ;;  %672 = vmatprep.mubr.msk.f32.mxu1 %vm980_vm0, %v981_v1  ;;  %vm1171_vm5 = vmpackc.low %vm258_vm1, %vm982_vm4  ;;  %v333_v4 = vld [vmem:[%s1282_s3 + $0x8] sm:$0x1]  ;;  %v639_v30 = vld [vmem:[%s1282_s3 + $0x10] sm:$0xff]  ;;  %s983_s11 = smov 121   ;;  %s220_s5 = sand.u32 1, %s937_s0   ;;  %vm410_vm7 = vcmask 64512  }
  0x55   : > { %s224_s30 = scalar_select %p223_p3, %s957_s25, 1  ;;  %v687_v8 = vpack.c.bf16 %v333_v4, %v332_v3  ;;  %v640_v31 = vld [vmem:[%s1282_s3 + $0x18] sm:$0x1]  ;;  %vm502_vm8 = vcmask 130112  }
  0x56   : > { %v691_v32 = vpack.c.bf16 %v640_v31, %v639_v30  ;;  %s630_s13 = sshll.u32 %s220_s5, 5  ;;  %s647_s8 = sshll.u32 %s961_s26, 3 }
  0x57   : > { %689 = vmatpush3.bf16.msk.msra.mxu1 %vm1171_vm5, %v687_v8  ;;  %s631_s9 = sshll.u32 %s224_s30, 3  ;;  %s222_s30 = scalar_lea.vmem [#allocation7], %s630_s13 }
  0x58   : > { %s228_s14 = scalar_lea.vmem %s196_s10, %s227_s7 [#allocation4]  ;;  %s226_s22 = scalar_lea.vmem %s1281_s2, %s631_s9 }
  0x59   : > { %v229_v5 = vld [vmem:[%s228_s14] sm:$0xff]  ;;  %v230_v6 = vld [vmem:[%s228_s14 + $0x8] sm:$0x1]  ;;  %v231_v7 = vld [vmem:[%s228_s14 + $0x10] sm:$0xff]  ;;  %s984_s9 = smov 8   ;;  %s519_s19 = sadd.s32 %s957_s25, %s647_s8 }
  0x5a   : > { %v232_v9 = vld [vmem:[%s228_s14 + $0x18] sm:$0x1]  ;;  %v233_v10 = vld [vmem:[%s228_s14 + $0x20] sm:$0xff]  ;;  %v234_v11 = vld [vmem:[%s228_s14 + $0x28] sm:$0x1]  ;;  %v238_v12 = vsel %vm237_vm2, %v229_v5, 0.0 }
  0x5b   : > { %v235_v13 = vld [vmem:[%s228_s14 + $0x30] sm:$0xff]  ;;  %v236_v14 = vld [vmem:[%s228_s14 + $0x38] sm:$0x1]  ;;  %v239_v15 = vsel %vm237_vm2, %v231_v7, 0.0  ;;  %v241_v16 = vsel %vm237_vm2, %v233_v10, 0.0  ;;  %v246_v17 = vsel %vm245_vm3, %v230_v6, 0.0 }
  0x5c   : > { %v240_v18 = vadd.f32 %v239_v15, %v238_v12  ;;  %v247_v19 = vsel %vm245_vm3, %v232_v9, 0.0  ;;  %v249_v20 = vsel %vm245_vm3, %v234_v11, 0.0  ;;  %v243_v21 = vsel %vm237_vm2, %v235_v13, 0.0  ;;  %v253_v29 = vld [vmem:[%s226_s22] sm:$0xff]  ;;  %s648_s22 = sshll.u32 %s519_s19, 7  ;;  %s522_s10 = sshll.u32 %s222_s30, 4  ;;  %s1215_s10 = int_to_ptr.vmem [resolvable:$true] %s522_s10 }
  0x5d   : > { %v248_v22 = vadd.f32 %v247_v19, %v246_v17  ;;  %v251_v24 = vsel %vm245_vm3, %v236_v14, 0.0  ;;  %s1213_s12 = scalar_lea.hbm %s1283_s4, %s648_s22  ;;  %s1217_s26 = scalar_lea.sflag [#allocation6], %s220_s5 }
  0x5e   : > { %v242_v23 = vadd.f32 %v241_v16, %v240_v18  ;;  %s849_s25 = scalar_lea.vmem %s1215_s10, 512  ;;  %p1295_p7 = scmp.ne.s32.totalorder %s1289_s15, 0 }
  0x5f   : > { %v250_v25 = vadd.f32 %v249_v20, %v248_v22  ;;  %p850_p12 = scmp.ne.s32.totalorder %s1215_s10, %s849_s25 }
  0x60   : > { %v244_v26 = vadd.f32 %v243_v21, %v242_v23 }
  0x61   : > { %v252_v27 = vadd.f32 %v251_v24, %v250_v25  ;;  %p851_p9 = pnand %p850_p12, %p1295_p7 }
  0x63   : > { %v683_v28 = vpack.c.bf16 %v252_v27, %v244_v26  ;;  %p852_p5 = pneg %p851_p9 }
  0x65   : > { %685 = vmatpush3.bf16.msk.msra.mxu0 %vm1171_vm5, %v683_v28 }
  0x66   : > { %690 = vmatprep.subr.bf16.mxu0 %v979_v0 }
  0x68   : > { %666 = vmatmul.mubr.msk.f32.vlgmr.msra.gmra.mrb[0].mxu0 %vm254_vm6, %v253_v29 }
  0x69   : > { %679 = vmatprep.mubr.msk.f32.mxu0 %vm980_vm0, %v981_v1  ;;  %693 = vmatpush3.bf16.msk.msra.mxu0 %vm1171_vm5, %v691_v32 }
 0x13b   : > { %v328_v33 = vpop.f32.mrb[0].mxu0 }
 0x13c   : > { %421 = vrot.lane.b32.xlu0 %v328_v33, %s983_s11  ;;  %v667_v34 = vpop.f32.mrb[1].mxu0  ;;  %673 = vmatmul.mubr.msk.f32.vlgmr.msra.gmra.mrb[0].mxu1 %vm254_vm6, %v328_v33  ;;  %s985_s11 = smov [#allocation7]  }
 0x13d   : > { %s853_s13 = sshll.u32 %s985_s11, 4  ;;  %s854_s13 = int_to_ptr.vmem [resolvable:$false] %s853_s13 }
 0x13e   : > { %s855_s8 = scalar_lea.vmem %s854_s13, 1024  ;;  %p856_p6 = scmp.lt.s32.totalorder %s1215_s10, %s854_s13 }
 0x13f   : > { %p857_p11 = scmp.lt.s32.totalorder %s855_s8, %s849_s25 }
 0x141   : > { %p858_p0 = por %p857_p11, %p856_p6 }
 0x143   : > { %p859_p8 = pnand %p858_p0, %p852_p5 }
 0x1ae   : > { %v422_v35 = vpop.permute.xlu0 %421 }
 0x1af   : > { %680 = vmatmul.mubr.msk.f32.vlgmr.msra.gmra.mrb[2].mxu0 %vm254_vm6, %v422_v35 }
 0x20f   : > { %v406_v36 = vpop.f32.mrb[0].mxu1 }
 0x210   : > { %411 = vst.msk [vmem:[%s222_s30] sm:$0xff] %vm410_vm7, %v406_v36  ;;  %636 = vst.msk [vmem:[%s222_s30 + $0x8] sm:$0xff] %vm410_vm7, %v406_v36  ;;  %v674_v37 = vpop.f32.mrb[1].mxu1 }
 0x211   : > { %637 = vst.msk [vmem:[%s222_s30 + $0x10] sm:$0xff] %vm410_vm7, %v406_v36  ;;  %638 = vst.msk [vmem:[%s222_s30 + $0x18] sm:$0xff] %vm410_vm7, %v406_v36 }
 0x282   : > { %v494_v38 = vpop.f32.mrb[2].mxu0 }
 0x283   : > { %499 = vrot.lane.b32.xlu0 %v494_v38, %s984_s9  ;;  %v681_v39 = vpop.f32.mrb[3].mxu0 }
 0x2f5   : > { %v500_v40 = vpop.permute.xlu0 %499 }
 0x2f6   : > { %503 = vst.msk [vmem:[%s222_s30] sm:$0xff] %vm502_vm8, %v500_v40  ;;  %643 = vst.msk [vmem:[%s222_s30 + $0x8] sm:$0xff] %vm502_vm8, %v500_v40 }
 0x2f7   : > { %644 = vst.msk [vmem:[%s222_s30 + $0x10] sm:$0xff] %vm502_vm8, %v500_v40  ;;  %645 = vst.msk [vmem:[%s222_s30 + $0x18] sm:$0xff] %vm502_vm8, %v500_v40 }
 0x2f8   : > { %862 = shalt.err (!%p859_p8)
}
 0x2f9   : > { %s863_s5 = scalar_lea.hbm %s1213_s12, 512  ;;  %s867_s22 = scalar_lea.hbm %s1283_s4, 2048 }
 0x2fa   : > { %p864_p2 = scmp.ne.s32.totalorder %s1213_s12, %s863_s5  ;;  %p868_p13 = scmp.lt.u32.totalorder %s1213_s12, %s1283_s4 }
 0x2fb   : > { %p869_p1 = scmp.lt.u32.totalorder %s867_s22, %s863_s5  ;;  %p871_p12 = scmp.lt.u32.totalorder %s863_s5, %s1213_s12 }
 0x2fc   : > { %p865_p4 = pnand %p864_p2, %p1295_p7 }
 0x2fd   : > { %p870_p3 = por %p869_p1, %p868_p13 }
 0x2fe   : > { %p866_p10 = pneg %p865_p4 }
 0x2ff   : > { %p872_p9 = por %p871_p12, %p870_p3 }
 0x301   : > { %p873_p5 = pnand %p872_p9, %p866_p10 }
 0x303   : > { %876 = shalt.err (!%p873_p5)
}
 0x304   : > { %s986_s25 = smov 128   ;;  %s987_s11 = smov 256  }
 0x305   : > { %696 = dma.vmem_to_hbm [thread:$0]  (%p1295_p7), %s1215_s10, 512, %s1213_s12, %s1217_s26, %s986_s25, %s987_s11, %s984_s9  }
 0x306 PF: > { %p707_p6 = scmp.ge.s32.totalorder %s973_s29, 2  ;;  %s537_s13 = sand.u32 1, %s933_s20  }
 0x307   : > { %p1296_p11 = scmp.ne.s32.totalorder %s1290_s18, 0  ;;  %s538_s8 = scalar_lea.sflag [#allocation6], %s537_s13 }
 0x309   : > { %p703_p0 = pnand %p707_p6, %p1296_p11 }
 0x30b   : > { %928 = dma.done.wait (!%p703_p0), %s538_s8, 512  }
 0x30c   : > { %930 = vsyncadd (!%p703_p0), %s538_s8, 4294966784  ;;  %s26_s29 = sadd.s32 1, %s973_s29   ;;  %s1297_s15 = sld [smem:[#allocation11_spill]] }
 0x30d   : > { %p23_p8 = scmp.ge.s32.totalorder %s26_s29, 6   ;;  %s1298_s20 = smov %s937_s0 }
 0x30e   : > { %s1299_s0 = smov %s941_s21  ;;  %s1300_s21 = smov %s1106_s17 }
 0x30f   : > { %s1301_s22 = smov %s949_s23  ;;  %s1302_s23 = smov %s953_s24 }
 0x310   : > { %s1303_s24 = smov %s1103_s16  ;;  %s1304_s25 = smov %s965_s27 }
 0x311   : > { %s1305_s26 = smov %s969_s28  ;;  %s1306_s27 = smov %s1309_s6 }
 0x312   : > { %s1307_s28 = smov %s1297_s15  ;;  %25 = sbr.rel (!%p23_p8) target bundleno = 24 (0x18), region = 85 }
 0x319   :  { %543 = vsyncpa [#allocation5], 1 }
 0x31a   :  { %545 = vsyncpa [#allocation5 + $0x1], 1 }
 0x31b   :  { %546 = vsyncpa [#allocation6], 1 }
 0x31c   :  { %548 = vsyncpa [#allocation6 + $0x1], 1 }

</bundles_post_ra>
